<compile_context>
chip_gen: v7x
topology: tpu7x:2x2x1
jax: 0.10.0
libtpu: 0.0.40
codegen_flags: <defaults>
</compile_context>

<pallas_src>
import functools
import math

import numpy as np
import jax
import jax.numpy as jnp
from jax.experimental import pallas as pl
from jax.experimental.pallas import tpu as pltpu


_LANE = 128
_SUBLANE = 8


def _round_up(x, m):
    return ((x + m - 1) // m) * m


# ---------------------------------------------------------------------------
# Parameter / buffer construction (mirrors SincConv_fast.__init__, deterministic)
# ---------------------------------------------------------------------------
def _to_mel(hz):
    return 2595 * np.log10(1 + hz / 700)


def _to_hz(mel):
    return 700 * (10 ** (mel / 2595) - 1)


def make_sincconv_params(out_channels, kernel_size, sample_rate=16000,
                         min_low_hz=50, min_band_hz=50):
    if kernel_size % 2 == 0:
        kernel_size = kernel_size + 1

    low_hz = 30
    high_hz = sample_rate / 2 - (min_low_hz + min_band_hz)
    mel = np.linspace(_to_mel(low_hz), _to_mel(high_hz), out_channels + 1)
    hz = _to_hz(mel)

    low_hz_ = jnp.asarray(hz[:-1].reshape(-1, 1), dtype=jnp.float32)        # (C, 1)
    band_hz_ = jnp.asarray(np.diff(hz).reshape(-1, 1), dtype=jnp.float32)   # (C, 1)

    n_lin = np.linspace(0, kernel_size / 2 - 1, int(kernel_size / 2))
    window_ = jnp.asarray(0.54 - 0.46 * np.cos(2 * math.pi * n_lin / kernel_size),
                          dtype=jnp.float32)                                # (K//2,)

    n = (kernel_size - 1) / 2.0
    n_ = jnp.asarray(2 * math.pi * np.arange(-n, 0).reshape(1, -1) / sample_rate,
                     dtype=jnp.float32)                                     # (1, K//2)

    return kernel_size, low_hz_, band_hz_, window_, n_


def build_filters(low_hz_, band_hz_, window_, n_, sample_rate,
                  min_low_hz=50, min_band_hz=50):
    """Mirror of the filter construction in SincConv_fast.forward (plain JAX glue)."""
    low = min_low_hz + jnp.abs(low_hz_)                                     # (C, 1)
    high = jnp.clip(low + min_band_hz + jnp.abs(band_hz_),
                    min_low_hz, sample_rate / 2)                            # (C, 1)
    band = (high - low)[:, 0]                                               # (C,)

    f_times_t_low = low @ n_                                                # (C, K//2)
    f_times_t_high = high @ n_                                              # (C, K//2)

    band_pass_left = ((jnp.sin(f_times_t_high) - jnp.sin(f_times_t_low))
                      / (n_ / 2)) * window_                                 # (C, K//2)
    band_pass_center = 2 * band[:, None]                                    # (C, 1)
    band_pass_right = jnp.flip(band_pass_left, axis=1)                      # (C, K//2)

    band_pass = jnp.concatenate(
        [band_pass_left, band_pass_center, band_pass_right], axis=1)        # (C, K)
    band_pass = band_pass / (2 * band[:, None])
    return band_pass                                                        # (C, K)


# ---------------------------------------------------------------------------
# Pallas kernel: 1-D convolution (in_channels = 1, stride=1, dilation=1)
# ---------------------------------------------------------------------------
def _sinc_conv_kernel(x_ref, w_ref, o_ref, z_ref, *, t_blk, n_kc, c_out):
    """One (batch b, time-tile tb) grid step.

    x_ref : (1, 1, L_pad)              full zero-padded waveform of batch b
    w_ref : (C_pad, K_pad)             filter bank (compute dtype), each
                                       128-tap chunk reversed on the host
    o_ref : (1, C, T_BLK)              output tile
    z_ref : (128, T_BLK + (n_kc-1)*128) compute-dtype phase-matrix scratch:
                                       z_ref[r, c] = x_seg[c + 127 - r]
    """
    seg = t_blk + n_kc * _LANE
    tb = pl.program_id(1)
    t0 = pl.multiple_of(tb * t_blk, _LANE)

    # Waveform segment covering this output tile plus the filter overhang.
    # (cast to f32 so the strided rotate always runs on an unpacked dtype)
    x_seg = x_ref[0, :, pl.ds(t0, seg)].astype(jnp.float32)       # (1, seg)

    # ---- build all 128 lane phases with ONE strided XLU rotate --------------
    #   rolled[r, c] = x_seg[(c - 1 - r) mod seg]
    # NOTE: the circular wrap deposits garbage only in columns [0, 128); those
    # columns are dropped below and the chunk reads never touch them.  Do not
    # change the chunk/column offsets without re-deriving this invariant.
    xb = jnp.broadcast_to(x_seg, (_LANE, seg))                    # sublane bcast
    rolled = pltpu.roll(xb, 1, axis=1, stride=1, stride_axis=0)   # (128, seg)
    z_ref[...] = rolled[:, _LANE:].astype(z_ref.dtype)            # drop unread cols

    # ---- K-chunked MXU matmuls, value-chain accumulation (f32) --------------
    # (no per-chunk accumulator round trip through VMEM; on v7x the partials
    #  stay in the MXU result buffer)
    acc = None
    for j in range(n_kc):
        w_j = w_ref[:, j * _LANE:(j + 1) * _LANE]                 # (C_pad, 128)
        z_j = z_ref[:, j * _LANE:j * _LANE + t_blk]               # (128, T_BLK)
        part = jnp.dot(w_j, z_j, preferred_element_type=jnp.float32)
        acc = part if acc is None else acc + part

    o_ref[0] = acc[:c_out, :].astype(o_ref.dtype)


def sinc_conv1d(waveforms, filters, *, padding=0, t_blk=2048,
                compute_dtype=jnp.bfloat16, out_dtype=None):
    """F.conv1d(waveforms, filters[:, None, :], stride=1, padding=padding)."""
    # TODO(synk): stride != 1 and dilation != 1 are not implemented in the
    #             kernel (module defaults are stride=1, padding=0, dilation=1).
    B, in_ch, L = waveforms.shape
    if in_ch != 1:
        raise ValueError("SincConv only supports one input channel")
    C, K = filters.shape
    out_dtype = waveforms.dtype if out_dtype is None else out_dtype

    if padding:
        waveforms = jnp.pad(waveforms, ((0, 0), (0, 0), (padding, padding)))
        L = L + 2 * padding
    t_out = L - K + 1
    if t_out <= 0:
        raise ValueError(f"kernel_size={K} larger than (padded) input length {L}")

    # --- tile / padding geometry --------------------------------------------
    k_pad = _round_up(K, _LANE)          # contraction dim, multiple of 128
    c_pad = _round_up(C, _SUBLANE)       # matmul sublane dim, multiple of 8
    n_kc = k_pad // _LANE                # number of 128-tap chunks

    t_blk = max(_LANE, min(_round_up(t_blk, _LANE), _round_up(t_out, _LANE)))
    n_tb = pl.cdiv(t_out, t_blk)
    # Keep the total grid (B * n_tb) even when cheap to do so: v7x shards the
    # two "parallel" axes across its 2 TensorCores.
    if B % 2 == 1 and n_tb % 2 == 1 and n_tb > 1:
        alt = max(_LANE, _round_up(pl.cdiv(t_out, n_tb + 1), _LANE))
        n_alt = pl.cdiv(t_out, alt)
        if n_alt % 2 == 0:
            t_blk, n_tb = alt, n_alt
    t_pad = n_tb * t_blk
    l_pad = t_pad + k_pad                # samples the kernel may touch

    # Zero-pad the waveform so every tile's segment is in-bounds.
    x = jnp.pad(waveforms, ((0, 0), (0, 0), (0, l_pad - L)))

    # Zero-pad the filter bank to (c_pad, k_pad), reverse each 128-tap chunk
    # (phase row r of chunk j holds tap 128*j + 127 - r) and pre-cast to the
    # MXU compute dtype (bf16 by default) on the host.
    w = jnp.pad(filters, ((0, c_pad - C), (0, k_pad - K)))
    w = w.reshape(c_pad, n_kc, _LANE)[:, :, ::-1].reshape(c_pad, k_pad)
    w = w.astype(compute_dtype)

    kernel = functools.partial(_sinc_conv_kernel, t_blk=t_blk, n_kc=n_kc, c_out=C)

    out = pl.pallas_call(
        kernel,
        out_shape=jax.ShapeDtypeStruct((B, C, t_pad), out_dtype),
        grid_spec=pltpu.PrefetchScalarGridSpec(
            num_scalar_prefetch=0,
            grid=(B, n_tb),              # batch outermost, time tiles inner
            in_specs=[
                # Full (padded) waveform; block index constant over the T axis
                # so it is fetched once per batch step.
                pl.BlockSpec((1, 1, l_pad), lambda b, t: (b, 0, 0)),
                # Full padded, chunk-reversed, compute-dtype filter bank.
                pl.BlockSpec((c_pad, k_pad), lambda b, t: (0, 0)),
            ],
            # NOTE: if output writeback ever shows as exposed, add
            # pipeline_mode=pl.Buffered(3) here (VMEM headroom allows it).
            out_specs=pl.BlockSpec((1, C, t_blk), lambda b, t: (b, 0, t)),
            scratch_shapes=[
                # phase matrix (first, never-read 128 columns are not stored)
                pltpu.VMEM((_LANE, t_blk + (n_kc - 1) * _LANE), compute_dtype),
            ],
        ),
        compiler_params=pltpu.CompilerParams(
            # Both axes are independent -> shard across TensorCores on v7x.
            dimension_semantics=("parallel", "parallel"),
        ),
    )(x, w)

    if t_pad != t_out:
        out = out[:, :, :t_out]
    return out


def sincconv_fast_forward(waveforms, params, sample_rate=16000,
                          min_low_hz=50, min_band_hz=50, padding=0,
                          t_blk=2048, compute_dtype=jnp.bfloat16,
                          out_dtype=None):
    """Full SincConv_fast.forward: derive filters (tiny, plain JAX) + Pallas conv.

    compute_dtype=jnp.bfloat16 (default) uses bf16 MXU operands with f32
    accumulation; pass jnp.float32 for bit-faithful f32 matmul operands.
    """
    _, low_hz_, band_hz_, window_, n_ = params
    filters = build_filters(low_hz_, band_hz_, window_, n_,
                            sample_rate, min_low_hz, min_band_hz)   # (C, K)
    return sinc_conv1d(waveforms, filters, padding=padding, t_blk=t_blk,
                       compute_dtype=compute_dtype, out_dtype=out_dtype)


# ---------------------------------------------------------------------------
# Example / smoke test
# ---------------------------------------------------------------------------
if __name__ == "__main__":
    batch = 2
    out_channels = 6          # exercises C padding (6 -> 8 sublanes)
    kernel_size = 129         # odd; K_pad = 256 -> two 128-tap chunks
    n_samples = 640
    sample_rate = 16000

    params = make_sincconv_params(out_channels, kernel_size, sample_rate)

    key = jax.random.PRNGKey(0)
    waveforms = jax.random.normal(key, (batch, 1, n_samples), dtype=jnp.float32)

    # Pure-JAX reference for the convolution (correctness check).
    K = params[0]
    filters = build_filters(params[1], params[2], params[3], params[4],
                            sample_rate)
    t_out = n_samples - K + 1
    patches = jnp.stack(
        [waveforms[:, 0, k:k + t_out] for k in range(K)], axis=1)   # (B, K, T)
    ref = jnp.einsum("ck,bkt->bct", filters, patches,
                     precision=jax.lax.Precision.HIGHEST)
    ref = np.asarray(jax.block_until_ready(ref))

    # 1) Default (perf) path: bf16 MXU operands, f32 accumulation.
    #    t_blk=256 -> two time tiles of the 512-sample output (exercises tiling).
    out_bf16 = sincconv_fast_forward(waveforms, params, sample_rate=sample_rate,
                                     t_blk=256)
    out_bf16 = np.asarray(jax.block_until_ready(out_bf16))
    assert out_bf16.shape == (batch, out_channels, t_out), out_bf16.shape
    scale = max(1.0, float(np.max(np.abs(ref))))
    np.testing.assert_allclose(out_bf16, ref, rtol=5e-2, atol=5e-2 * scale)

    # 2) Opt-in f32 path: tight numerical check against the reference.
    out_f32 = sincconv_fast_forward(waveforms, params, sample_rate=sample_rate,
                                    t_blk=256, compute_dtype=jnp.float32)
    out_f32 = np.asarray(jax.block_until_ready(out_f32))
    np.testing.assert_allclose(out_f32, ref, rtol=1e-4, atol=1e-4)

    print("KERNEL_OK")
</pallas_src>

<mosaic_0001>
module attributes {stable_mosaic.version = 11 : i64} {
  func.func @_sinc_conv_kernel(%arg0: i32, %arg1: i32, %arg2: memref<1x1x768xf32, #tpu.memory_space<vmem>>, %arg3: memref<8x256xbf16, #tpu.memory_space<vmem>>, %arg4: memref<1x6x256xf32, #tpu.memory_space<vmem>>, %arg5: memref<128x384xbf16, #tpu.memory_space<vmem>>) attributes {dimension_semantics = [#tpu.dimension_semantics<parallel>, #tpu.dimension_semantics<parallel>], iteration_bounds = array<i64: 2, 2>, scalar_prefetch = 0 : i64, scratch_operands = 1 : i64, tpu.core_type = #tpu.core_type<tc>, window_params = [{transform_indices = @transform_0, window_bounds = array<i64: 1, 1, 768>}, {pipeline_mode = #tpu.pipeline_mode<synchronous>, transform_indices = @transform_1, window_bounds = array<i64: 8, 256>}, {transform_indices = @transform_2, window_bounds = array<i64: 1, 6, 256>}]} {
    %c256_i32 = arith.constant 256 : i32
    %0 = arith.muli %arg1, %c256_i32 : i32
    %1 = tpu.assume_multiple %0, 128 : i32
    %c0 = arith.constant 0 : index
    %c0_0 = arith.constant 0 : index
    %2 = arith.index_cast %1 : i32 to index
    %3 = vector.load %arg2[%c0, %c0_0, %2] : memref<1x1x768xf32, #tpu.memory_space<vmem>>, vector<1x1x512xf32>
    %4 = vector.shape_cast %3 : vector<1x1x512xf32> to vector<1x512xf32>
    %5 = vector.shape_cast %4 : vector<1x512xf32> to vector<1x512xf32>
    %6 = vector.broadcast %5 : vector<1x512xf32> to vector<128x512xf32>
    %c1_i32 = arith.constant 1 : i32
    %7 = tpu.dynamic_rotate %6 by %c1_i32 dim 1 {stride = 1 : si32, stride_dimension = 0 : si32} : vector<128x512xf32>, i32 -> vector<128x512xf32>
    %8 = vector.extract_strided_slice %7 {offsets = [0, 128], sizes = [128, 384], strides = [1, 1]} : vector<128x512xf32> to vector<128x384xf32>
    %9 = arith.truncf %8 : vector<128x384xf32> to vector<128x384xbf16>
    %c0_1 = arith.constant 0 : index
    %c0_2 = arith.constant 0 : index
    %10 = vector.load %arg5[%c0_1, %c0_2] : memref<128x384xbf16, #tpu.memory_space<vmem>>, vector<128x384xbf16>
    tpu.vector_store %arg5[%c0_1, %c0_2], %9 {strides = array<i32>} : memref<128x384xbf16, #tpu.memory_space<vmem>>, vector<128x384xbf16>,
    %c0_3 = arith.constant 0 : index
    %c0_4 = arith.constant 0 : index
    %11 = vector.load %arg3[%c0_3, %c0_4] : memref<8x256xbf16, #tpu.memory_space<vmem>>, vector<8x128xbf16>
    %c0_5 = arith.constant 0 : index
    %c0_6 = arith.constant 0 : index
    %12 = vector.load %arg5[%c0_5, %c0_6] : memref<128x384xbf16, #tpu.memory_space<vmem>>, vector<128x256xbf16>
    %cst = arith.constant dense<0.000000e+00> : vector<8x256xf32>
    %13 = tpu.matmul %11, %12, %cst {dimension_numbers = #tpu.dot_dimension_numbers<[1], [0], [0], [1], [0, 0, 1, 1], [], []>} : vector<8x128xbf16>, vector<128x256xbf16>, vector<8x256xf32> -> vector<8x256xf32>
    %c0_7 = arith.constant 0 : index
    %c128 = arith.constant 128 : index
    %14 = vector.load %arg3[%c0_7, %c128] : memref<8x256xbf16, #tpu.memory_space<vmem>>, vector<8x128xbf16>
    %c0_8 = arith.constant 0 : index
    %c128_9 = arith.constant 128 : index
    %15 = vector.load %arg5[%c0_8, %c128_9] : memref<128x384xbf16, #tpu.memory_space<vmem>>, vector<128x256xbf16>
    %cst_10 = arith.constant dense<0.000000e+00> : vector<8x256xf32>
    %16 = tpu.matmul %14, %15, %cst_10 {dimension_numbers = #tpu.dot_dimension_numbers<[1], [0], [0], [1], [0, 0, 1, 1], [], []>} : vector<8x128xbf16>, vector<128x256xbf16>, vector<8x256xf32> -> vector<8x256xf32>
    %17 = arith.addf %13, %16 : vector<8x256xf32>
    %18 = vector.extract_strided_slice %17 {offsets = [0, 0], sizes = [6, 256], strides = [1, 1]} : vector<8x256xf32> to vector<6x256xf32>
    %c0_11 = arith.constant 0 : index
    %c0_12 = arith.constant 0 : index
    %c0_13 = arith.constant 0 : index
    %19 = vector.load %arg4[%c0_11, %c0_12, %c0_13] : memref<1x6x256xf32, #tpu.memory_space<vmem>>, vector<1x6x256xf32>
    %20 = vector.shape_cast %19 : vector<1x6x256xf32> to vector<6x256xf32>
    %21 = vector.shape_cast %18 : vector<6x256xf32> to vector<1x6x256xf32>
    tpu.vector_store %arg4[%c0_11, %c0_12, %c0_13], %21 {strides = array<i32>} : memref<1x6x256xf32, #tpu.memory_space<vmem>>, vector<1x6x256xf32>,
    return
  }
  func.func @transform_0(%arg0: i32, %arg1: i32) -> (i32, i32, i32) {
    %c0_i32 = arith.constant 0 : i32
    %c0_i32_0 = arith.constant 0 : i32
    %c0_i32_1 = arith.constant 0 : i32
    return %arg0, %c0_i32, %c0_i32_0 : i32, i32, i32
  }
  func.func @transform_1(%arg0: i32, %arg1: i32) -> (i32, i32) {
    %c0_i32 = arith.constant 0 : i32
    %c0_i32_0 = arith.constant 0 : i32
    %c0_i32_1 = arith.constant 0 : i32
    return %c0_i32, %c0_i32_0 : i32, i32
  }
  func.func @transform_2(%arg0: i32, %arg1: i32) -> (i32, i32, i32) {
    %c0_i32 = arith.constant 0 : i32
    %c0_i32_0 = arith.constant 0 : i32
    return %arg0, %c0_i32, %arg1 : i32, i32, i32
  }
}

</mosaic_0001>

<bundles_post_ra>
// kernel: tpu_custom_call.1
= control target key start
LH: loop header
LB: loop body
LE: loop exit
PB: predicated region body
PF: predicated region fallthrough
CT: control target
= control target key end

     0   :  { %7 = vsyncpa [#allocation4], 0  ;;  %s1724_s0 = inlined_call_operand.hbm [shape: f32[2,1,768], index: 0, kind: input, shape index: {}]   ;;  %s1725_s1 = inlined_call_operand.hbm [shape: bf16[8,256], index: 1, kind: input, shape index: {}]   ;;  %s1726_s2 = inlined_call_operand.vmem [shape: f32[2,6,512], index: 2, kind: output, shape index: {}]  }
   0x1   :  { %9 = vsyncpa [#allocation4 + $0x1], 0 }
   0x2   :  { %10 = vsyncpa [#allocation6], 0  ;;  %s1279_s9 = smov 0   ;;  %s1281_s10 = smov 0  }
   0x3   :  { %s1283_s11 = smov 0   ;;  %s1285_s12 = smov 0  }
   0x4   :  { %s1287_s13 = smov 0   ;;  %s1289_s14 = smov 0  }
   0x5   :  { %s1291_s15 = smov 0   ;;  %s1293_s16 = smov 0  }
   0x6 LB: > { %s837_s17 = sadd.s32 4294967295, %s1243_s16   ;;  %p48_p0 = scmp.ne.s32.totalorder %s1219_s10, %s1215_s9  ;;  %s1243_s16 = sphi %s1293_s16, %s16_s16   ;;  %s1239_s15 = sphi %s1291_s15, %s1745_s15   ;;  %s1235_s14 = sphi %s1289_s14, %s1744_s14   ;;  %s1231_s13 = sphi %s1287_s13, %s1743_s13   ;;  %s1227_s12 = sphi %s1285_s12, %s1742_s12   ;;  %s1223_s11 = sphi %s1283_s11, %s1741_s11   ;;  %s1219_s10 = sphi %s1281_s10, %s1740_s10   ;;  %s1215_s9 = sphi %s1279_s9, %s1739_s9  }
   0x7   : > { %p1319_p1 = scmp.eq.s32.totalorder %s837_s17, 0  ;;  %p839_p2 = scmp.ge.s32.totalorder %s1243_s16, 1 }
   0x8   : > { %p108_p3 = scmp.lt.s32.totalorder %s1243_s16, 5  ;;  %s1245_s21 = smov [#allocation5]  }
   0x9   : > { %s1731_s18 = scalar_select %p1319_p1, 1, 0 }
   0xa   : > { %p1327_p4 = por %p1319_p1, %p48_p0  ;;  %p1331_p5 = pnand %p839_p2, %p108_p3 }
   0xb   : > { %s121_s22 = sshll.u32 %s1245_s21, 4  ;;  %s25_s24 = sadd.s32 1, %s1235_s14  ;;  %s122_s22 = int_to_ptr.vmem [resolvable:$true] %s121_s22 }
   0xc   : > { %s1732_s19 = scalar_select %p1327_p4, 1, 0 }
   0xd   : > { %s1733_s20 = scalar_select %p1331_p5, 1, 0 }
   0xe   : > { %p862_p6 = pneg %p1331_p5  ;;  %s1115_s27 = scalar_lea.hbm %s1725_s1, 128 }
   0xf   : > { %p1116_p8 = scmp.ne.s32.totalorder %s1725_s1, %s1115_s27  ;;  %p1122_p12 = scmp.lt.u32.totalorder %s1115_s27, %s1725_s1 }
  0x10   : > { %p1339_p7 = pnand %p862_p6, %p1319_p1 }
  0x12   : > { %p1117_p9 = pneg %p1339_p7 }
  0x14   : > { %p1118_p10 = pnand %p1117_p9, %p1116_p8 }
  0x16   : > { %p1119_p11 = pneg %p1118_p10 }
  0x18   : > { %p1124_p13 = pnand %p1122_p12, %p1119_p11 }
  0x1a   : > { %1127 = shalt.err (!%p1124_p13)
}
  0x1b   : > { %s1128_s4 = scalar_lea.vmem %s122_s22, 128  ;;  %p1136_p6 = scmp.lt.s32.totalorder %s122_s22, %s122_s22 }
  0x1c   : > { %p1129_p0 = scmp.ne.s32.totalorder %s122_s22, %s1128_s4  ;;  %p1137_p1 = scmp.lt.s32.totalorder %s1128_s4, %s1128_s4 }
  0x1e   : > { %p1131_p2 = pnand %p1129_p0, %p1117_p9  ;;  %p1138_p4 = por %p1137_p1, %p1136_p6 }
  0x20   : > { %p1132_p3 = pneg %p1131_p2 }
  0x22   : > { %p1139_p5 = pnand %p1138_p4, %p1132_p3 }
  0x24   : > { %1142 = shalt.err (!%p1139_p5)
}
  0x25   : > { %865 = dma.hbm_to_vmem [thread:$0]  (!%p1339_p7), %s1725_s1, 128, %s122_s22, [#allocation6]  }
  0x26   : > { %p26_p8 = scmp.ge.s32.totalorder %s25_s24, 2  ;;  %s28_s7 = sadd.s32 1, %s1239_s15 }
  0x27   : > { %s35_s8 = sadd.s32 1, %s1223_s11  ;;  %p42_p1 = scmp.ne.s32.totalorder %s1223_s11, %s1219_s10 }
  0x28   : > { %s1747_s24 = smov (%p26_p8, %s25_s24), 0  ;;  %s1749_s7 = smov (!%p26_p8, %s28_s7), %s1239_s15 }
  0x29   : > { %p43_p4 = scmp.eq.s32.totalorder %s1243_s16, 0  ;;  %p871_p5 = scmp.lt.s32.totalorder %s1243_s16, 4 }
  0x2a   : > { %p30_p9 = scmp.ge.s32.totalorder %s1749_s7, 2  ;;  %s132_s9 = sand.u32 1, %s1223_s11  }
  0x2b   : > { %p44_p10 = por %p43_p4, %p42_p1  ;;  %s853_s17 = smul.u32 6, %s132_s9 }
  0x2c   : > { %s1751_s7 = smov (%p30_p9, %s1749_s7), 0  ;;  %s854_s23 = smul.u32 96, %s1239_s15 }
  0x2d   : > { %p1372_p11 = pnand %p871_p5, %p44_p10  ;;  %s32_s22 = ssub.s32 %s1239_s15, %s1751_s7 }
  0x2e   : > { %p33_p7 = scmp.eq.s32.totalorder %s32_s22, 0  ;;  %s1382_s27 = scalar_lea.hbm %s1724_s0, %s854_s23 }
  0x2f   : > { %s136_s28 = scalar_lea.vmem [#allocation3], %s853_s17  ;;  %s133_s3 = scalar_lea.sflag [#allocation4], %s132_s9 }
  0x30   : > { %s144_s29 = sshll.u32 %s136_s28, 4  ;;  %s1143_s4 = scalar_lea.hbm %s1382_s27, 96  ;;  %s1387_s29 = int_to_ptr.vmem [resolvable:$true] %s144_s29 }
  0x31   : > { %s1385_s30 = scalar_select %p33_p7, %s1223_s11, %s35_s8  }
  0x32   : > { %p1144_p12 = scmp.ne.s32.totalorder %s1382_s27, %s1143_s4  ;;  %p1145_p13 = pneg %p1372_p11 }
  0x33   : > { %s1148_s22 = scalar_lea.hbm %s1724_s0, 192  ;;  %p1149_p3 = scmp.lt.u32.totalorder %s1382_s27, %s1724_s0 }
  0x34   : > { %p1146_p0 = pnand %p1145_p13, %p1144_p12  ;;  %p1150_p6 = scmp.lt.u32.totalorder %s1148_s22, %s1143_s4 }
  0x35   : > { %p1152_p1 = scmp.lt.u32.totalorder %s1143_s4, %s1382_s27 }
  0x36   : > { %p1147_p2 = pneg %p1146_p0  ;;  %p1151_p8 = por %p1150_p6, %p1149_p3 }
  0x38   : > { %p1153_p4 = por %p1152_p1, %p1151_p8 }
  0x3a   : > { %p1154_p5 = pnand %p1153_p4, %p1147_p2 }
  0x3c   : > { %1157 = shalt.err (!%p1154_p5)
}
  0x3d   : > { %s1158_s8 = scalar_lea.vmem %s1387_s29, 96  ;;  %s1246_s9 = smov [#allocation3]  }
  0x3e   : > { %p1159_p9 = scmp.ne.s32.totalorder %s1387_s29, %s1158_s8  ;;  %s1163_s25 = sshll.u32 %s1246_s9, 4  ;;  %s1164_s25 = int_to_ptr.vmem [resolvable:$false] %s1163_s25 }
  0x3f   : > { %s1165_s26 = scalar_lea.vmem %s1164_s25, 192  ;;  %p1166_p12 = scmp.lt.s32.totalorder %s1387_s29, %s1164_s25 }
  0x40   : > { %p1161_p10 = pnand %p1159_p9, %p1145_p13  ;;  %p1167_p0 = scmp.lt.s32.totalorder %s1165_s26, %s1158_s8 }
  0x42   : > { %p1162_p7 = pneg %p1161_p10  ;;  %p1168_p3 = por %p1167_p0, %p1166_p12 }
  0x44   : > { %p1169_p6 = pnand %p1168_p3, %p1162_p7 }
  0x46   : > { %1172 = shalt.err (!%p1169_p6)
}
  0x47   : > { %869 = dma.hbm_to_vmem [thread:$0]  (!%p1372_p11), %s1382_s27, 96, %s1387_s29, %s133_s3  }
  0x48   : > { %p1736_p2 = scmp.ne.s32.totalorder %s1733_s20, 0 }
  0x49   : > { %s155_s28 = sand.u32 (!%p1736_p2), 1, %s1219_s10   ;;  %p1737_p13 = scmp.ne.s32.totalorder (!%p1736_p2), %s1732_s19, 0 }
  0x4a   : > { %153 = sbr.rel (%p1736_p2) target bundleno = 495 (0x1ef), region = 28  ;;  %s156_s5 = scalar_lea.sflag (!%p1736_p2), [#allocation4], %s155_s28 }
  0x4b   : > { %s855_s4 = smul.u32 (!%p1736_p2), 6, %s155_s28 }
  0x4d   : > { %s159_s6 = scalar_lea.vmem (!%p1736_p2), [#allocation3], %s855_s4 }
  0x51   : > { %1206 = dma.done.wait (%p1737_p13), %s156_s5, 96  }
  0x52   : > { %1208 = vsyncadd (%p1737_p13), %s156_s5, 4294967200  ;;  %p1738_p8 = scmp.ne.s32.totalorder %s1731_s18, 0 }
  0x54   : > { %1210 = dma.done.wait (%p1738_p8), [#allocation6], 128  }
  0x55   : > { %1212 = vsyncadd (%p1738_p8), [#allocation6], 4294967168  ;;  %s848_s20 = sshll.u32 %s1227_s12, 8  ;;  %v205_v0 = vlaneseq  ;;  %s1247_s18 = smov 265   ;;  %v1261_v30 = vmov 0  }
  0x56   : > { %s200_s21 = sshra.s32 %s848_s20, 7  ;;  %s1248_s19 = smov 257   ;;  %679 = vmatprep.mubr.bf16.mxu1 %v1261_v30  ;;  %720 = vmatprep.mubr.bf16.mxu0 %v1261_v30 }
  0x57   : > { %v1426_v1 = vshrl.u32 %v205_v0, 7  ;;  %v1428_v2 = vand.u32 127, %v205_v0  ;;  %s202_s27 = scalar_lea.vmem %s159_s6, %s200_s21 [#allocation3]  ;;  %s1249_s29 = smov 273  }
  0x58   : > { %v203_v10 = vld [vmem:[%s202_s27] sm:$0xf]  ;;  %s1250_s3 = smov 281   ;;  %s1251_s22 = smov 289  }
  0x59   : > { %v207_v3 = vsub.s32 0, %v1426_v1  ;;  %v211_v4 = vsub.s32 1, %v1426_v1  ;;  %v215_v5 = vsub.s32 2, %v1426_v1  ;;  %v219_v6 = vsub.s32 3, %v1426_v1  ;;  %s1252_s23 = smov 297   ;;  %s1253_s17 = smov 305  }
  0x5a   : > { %v1435_v7 = vadd.s32 1, %v1426_v1  ;;  %v1438_v8 = vadd.s32 9, %v1426_v1  ;;  %v1441_v9 = vadd.s32 17, %v1426_v1  ;;  %v1456_v17 = vadd.s32 25, %v1426_v1  ;;  %s1254_s8 = smov 313   ;;  %s1255_s9 = smov 321  }
  0x5b   : > { %v208_v11 = vrot.slane %v203_v10, %v207_v3  ;;  %v212_v12 = vrot.slane %v203_v10, %v211_v4  ;;  %v216_v13 = vrot.slane %v203_v10, %v215_v5  ;;  %v220_v14 = vrot.slane %v203_v10, %v219_v6  ;;  %s1256_s25 = smov 329   ;;  %s1257_s26 = smov 337  }
  0x5c   : > { %vm246_vm0 = vcmp.lt.s32.totalorder %v1428_v2, %v1435_v7  ;;  %vm267_vm1 = vcmp.lt.s32.totalorder %v1428_v2, %v1438_v8  ;;  %vm288_vm2 = vcmp.lt.s32.totalorder %v1428_v2, %v1441_v9  ;;  %v1461_v18 = vadd.s32 33, %v1426_v1  ;;  %s1258_s28 = smov 345   ;;  %s1259_s4 = smov 353  }
  0x5d   : > { %v1449_v15 = vpack.i.bf16 %v216_v13, %v212_v12  ;;  %v1453_v16 = vpack.i.bf16 %v208_v11, %v220_v14  ;;  %vm309_vm3 = vcmp.lt.s32.totalorder %v1428_v2, %v1456_v17  ;;  %v1468_v19 = vadd.s32 41, %v1426_v1  ;;  %s1260_s5 = smov 361   ;;  %s1262_s6 = smov 369  }
  0x5e   : > { %vm330_vm4 = vcmp.lt.s32.totalorder %v1428_v2, %v1461_v18  ;;  %v1475_v20 = vadd.s32 49, %v1426_v1  ;;  %v1482_v21 = vadd.s32 57, %v1426_v1  ;;  %v1489_v22 = vadd.s32 65, %v1426_v1  ;;  %s1263_s20 = smov 377   ;;  %s845_s21 = sshll.u32 %s1227_s12, 1 }
  0x5f   : > { %966 = vrot.lane.b32.xlu1 %v1449_v15, %s1247_s18  ;;  %956 = vrot.lane.b32.xlu0 %v1449_v15, %s1248_s19  ;;  %vm351_vm5 = vcmp.lt.s32.totalorder %v1428_v2, %v1468_v19  ;;  %v1496_v23 = vadd.s32 73, %v1426_v1  ;;  %v1503_v24 = vadd.s32 81, %v1426_v1  ;;  %v1510_v25 = vadd.s32 89, %v1426_v1  ;;  %p189_p11 = scmp.lt.s32.totalorder %s1231_s13, 1  ;;  %p191_p1 = scmp.lt.s32.totalorder %s845_s21, 3 }
  0x60   : > { %vm372_vm6 = vcmp.lt.s32.totalorder %v1428_v2, %v1475_v20  ;;  %vm393_vm7 = vcmp.lt.s32.totalorder %v1428_v2, %v1482_v21  ;;  %vm414_vm8 = vcmp.lt.s32.totalorder %v1428_v2, %v1489_v22  ;;  %v1517_v26 = vadd.s32 97, %v1426_v1 }
  0x61   : > { %vm435_vm9 = vcmp.lt.s32.totalorder %v1428_v2, %v1496_v23  ;;  %vm456_vm10 = vcmp.lt.s32.totalorder %v1428_v2, %v1503_v24  ;;  %vm477_vm11 = vcmp.lt.s32.totalorder %v1428_v2, %v1510_v25  ;;  %v1524_v27 = vadd.s32 105, %v1426_v1  ;;  %s1753_s13 = smov (!%p189_p11, %s1231_s13), 1  ;;  %s1755_s21 = smov (!%p191_p1, %s845_s21), 3 }
  0x62   : > { %vm498_vm12 = vcmp.lt.s32.totalorder %v1428_v2, %v1517_v26  ;;  %v1531_v28 = vadd.s32 113, %v1426_v1  ;;  %v1538_v29 = vadd.s32 121, %v1426_v1  ;;  %s846_s27 = sshll.u32 %s1753_s13, 2 }
  0x63   : > { %971 = vrot.lane.b32.xlu1 %v1453_v16, %s1247_s18  ;;  %961 = vrot.lane.b32.xlu0 %v1453_v16, %s1248_s19  ;;  %vm519_vm13 = vcmp.lt.s32.totalorder %v1428_v2, %v1524_v27  ;;  %s194_s18 = sadd.s32 %s846_s27, %s1755_s21 }
  0x64   : > { %vm540_vm14 = vcmp.lt.s32.totalorder %v1428_v2, %v1531_v28  ;;  %vm561_vm15 = vcmp.lt.s32.totalorder %v1428_v2, %v1538_v29  ;;  %s847_s19 = sshll.u32 %s194_s18, 3 }
  0x67   : > { %981 = vrot.lane.b32.xlu1 %v1453_v16, %s1249_s29  ;;  %976 = vrot.lane.b32.xlu0 %v1449_v15, %s1249_s29 }
  0x6b   : > { %991 = vrot.lane.b32.xlu1 %v1453_v16, %s1250_s3  ;;  %986 = vrot.lane.b32.xlu0 %v1449_v15, %s1250_s3 }
  0x6f   : > { %1001 = vrot.lane.b32.xlu1 %v1453_v16, %s1251_s22  ;;  %996 = vrot.lane.b32.xlu0 %v1449_v15, %s1251_s22  ;;  %s196_s22 = scalar_lea.vmem %s1726_s2, %s847_s19 }
  0x73   : > { %1011 = vrot.lane.b32.xlu1 %v1453_v16, %s1252_s23  ;;  %1006 = vrot.lane.b32.xlu0 %v1449_v15, %s1252_s23 }
  0x77   : > { %1021 = vrot.lane.b32.xlu1 %v1453_v16, %s1253_s17  ;;  %1016 = vrot.lane.b32.xlu0 %v1449_v15, %s1253_s17 }
  0x7b   : > { %1031 = vrot.lane.b32.xlu1 %v1453_v16, %s1254_s8  ;;  %1026 = vrot.lane.b32.xlu0 %v1449_v15, %s1254_s8 }
  0x7f   : > { %1041 = vrot.lane.b32.xlu1 %v1453_v16, %s1255_s9  ;;  %1036 = vrot.lane.b32.xlu0 %v1449_v15, %s1255_s9 }
  0x83   : > { %1051 = vrot.lane.b32.xlu1 %v1453_v16, %s1256_s25  ;;  %1046 = vrot.lane.b32.xlu0 %v1449_v15, %s1256_s25 }
  0x87   : > { %1061 = vrot.lane.b32.xlu1 %v1453_v16, %s1257_s26  ;;  %1056 = vrot.lane.b32.xlu0 %v1449_v15, %s1257_s26 }
  0x8b   : > { %1071 = vrot.lane.b32.xlu1 %v1453_v16, %s1258_s28  ;;  %1066 = vrot.lane.b32.xlu0 %v1449_v15, %s1258_s28 }
  0x8f   : > { %1081 = vrot.lane.b32.xlu1 %v1453_v16, %s1259_s4  ;;  %1076 = vrot.lane.b32.xlu0 %v1449_v15, %s1259_s4 }
  0x93   : > { %1091 = vrot.lane.b32.xlu1 %v1453_v16, %s1260_s5  ;;  %1086 = vrot.lane.b32.xlu0 %v1449_v15, %s1260_s5 }
  0x97   : > { %1101 = vrot.lane.b32.xlu1 %v1453_v16, %s1262_s6  ;;  %1096 = vrot.lane.b32.xlu0 %v1449_v15, %s1262_s6 }
  0x9b   : > { %1111 = vrot.lane.b32.xlu1 %v1453_v16, %s1263_s20  ;;  %1106 = vrot.lane.b32.xlu0 %v1449_v15, %s1263_s20 }
  0xd1   : > { %v967_v31 = vpop.permute.xlu1 %966  ;;  %v957_v32 = vpop.permute.xlu0 %956 }
  0xd2   : > { %v969_v33 = vunpack.i.h.bf16 %v967_v31  ;;  %v968_v34 = vunpack.i.l.bf16 %v967_v31  ;;  %v959_v35 = vunpack.i.h.bf16 %v957_v32  ;;  %v958_v36 = vunpack.i.l.bf16 %v957_v32 }
  0xd4   : > { %v248_v37 = vsel %vm246_vm0, %v958_v36, %v959_v35  ;;  %v269_v38 = vsel %vm267_vm1, %v968_v34, %v969_v33 }
  0xd5   : > { %v972_v39 = vpop.permute.xlu1 %971  ;;  %v962_v40 = vpop.permute.xlu0 %961  ;;  %v566_v41 = vpack.c.bf16 %v269_v38, %v248_v37 }
  0xd6   : > { %v974_v42 = vunpack.i.h.bf16 %v972_v39  ;;  %v973_v43 = vunpack.i.l.bf16 %v972_v39  ;;  %v964_v44 = vunpack.i.h.bf16 %v962_v40  ;;  %v963_v45 = vunpack.i.l.bf16 %v962_v40 }
  0xd7   : > { %688 = vmatprep.subr.bf16.mxu0 %v566_v41 }
  0xd8   : > { %v247_v46 = vsel %vm246_vm0, %v959_v35, %v963_v45  ;;  %v268_v47 = vsel %vm267_vm1, %v969_v33, %v973_v43  ;;  %v249_v48 = vsel %vm246_vm0, %v964_v44, %v958_v36  ;;  %v270_v49 = vsel %vm267_vm1, %v974_v42, %v968_v34 }
  0xd9   : > { %v982_v50 = vpop.permute.xlu1 %981  ;;  %v977_v51 = vpop.permute.xlu0 %976  ;;  %v567_v52 = vpack.c.bf16 %v268_v47, %v247_v46  ;;  %v565_v53 = vpack.c.bf16 %v270_v49, %v249_v48 }
  0xda   : > { %v983_v54 = vunpack.i.l.bf16 %v982_v50  ;;  %v979_v55 = vunpack.i.h.bf16 %v977_v51  ;;  %v978_v56 = vunpack.i.l.bf16 %v977_v51  ;;  %v984_v57 = vunpack.i.h.bf16 %v982_v50 }
  0xdb   : > { %647 = vmatprep.subr.bf16.mxu1 %v567_v52  ;;  %689 = vmatpush1.bf16.msra.mxu0 %v565_v53 }
  0xdc   : > { %648 = vmatpush1.bf16.msra.mxu1 %v566_v41  ;;  %v289_v0 = vsel %vm288_vm2, %v979_v55, %v983_v54  ;;  %v290_v1 = vsel %vm288_vm2, %v978_v56, %v979_v55  ;;  %v291_v5 = vsel %vm288_vm2, %v984_v57, %v978_v56 }
  0xdd   : > { %v992_v58 = vpop.permute.xlu1 %991  ;;  %v987_v59 = vpop.permute.xlu0 %986 }
  0xde   : > { %v994_v60 = vunpack.i.h.bf16 %v992_v58  ;;  %v993_v61 = vunpack.i.l.bf16 %v992_v58  ;;  %v989_v62 = vunpack.i.h.bf16 %v987_v59  ;;  %v988_v63 = vunpack.i.l.bf16 %v987_v59 }
  0xe0   : > { %v310_v3 = vsel %vm309_vm3, %v989_v62, %v993_v61  ;;  %v311_v4 = vsel %vm309_vm3, %v988_v63, %v989_v62  ;;  %v312_v6 = vsel %vm309_vm3, %v994_v60, %v988_v63 }
  0xe1   : > { %v1002_v7 = vpop.permute.xlu1 %1001  ;;  %v997_v8 = vpop.permute.xlu0 %996  ;;  %v570_v10 = vpack.c.bf16 %v310_v3, %v289_v0  ;;  %v569_v11 = vpack.c.bf16 %v311_v4, %v290_v1  ;;  %v568_v12 = vpack.c.bf16 %v312_v6, %v291_v5 }
  0xe2   : > { %v1003_v13 = vunpack.i.l.bf16 %v1002_v7  ;;  %v999_v14 = vunpack.i.h.bf16 %v997_v8  ;;  %v998_v15 = vunpack.i.l.bf16 %v997_v8  ;;  %v1004_v16 = vunpack.i.h.bf16 %v1002_v7 }
  0xe3   : > { %649 = vmatprep.subr.bf16.mxu1 %v570_v10  ;;  %690 = vmatprep.subr.bf16.mxu0 %v569_v11 }
  0xe4   : > { %650 = vmatpush1.bf16.msra.mxu1 %v569_v11  ;;  %691 = vmatpush1.bf16.msra.mxu0 %v568_v12  ;;  %v331_v34 = vsel %vm330_vm4, %v999_v14, %v1003_v13  ;;  %v332_v35 = vsel %vm330_vm4, %v998_v15, %v999_v14  ;;  %v333_v38 = vsel %vm330_vm4, %v1004_v16, %v998_v15 }
  0xe5   : > { %v1012_v30 = vpop.permute.xlu1 %1011  ;;  %v1007_v9 = vpop.permute.xlu0 %1006 }
  0xe6   : > { %v1014_v31 = vunpack.i.h.bf16 %v1012_v30  ;;  %v1013_v32 = vunpack.i.l.bf16 %v1012_v30  ;;  %v1009_v33 = vunpack.i.h.bf16 %v1007_v9  ;;  %v1008_v17 = vunpack.i.l.bf16 %v1007_v9 }
  0xe8   : > { %v352_v36 = vsel %vm351_vm5, %v1009_v33, %v1013_v32  ;;  %v353_v37 = vsel %vm351_vm5, %v1008_v17, %v1009_v33  ;;  %v354_v39 = vsel %vm351_vm5, %v1014_v31, %v1008_v17 }
  0xe9   : > { %v1022_v40 = vpop.permute.xlu1 %1021  ;;  %v1017_v41 = vpop.permute.xlu0 %1016  ;;  %v573_v42 = vpack.c.bf16 %v352_v36, %v331_v34  ;;  %v572_v43 = vpack.c.bf16 %v353_v37, %v332_v35  ;;  %v571_v44 = vpack.c.bf16 %v354_v39, %v333_v38 }
  0xea   : > { %v1023_v45 = vunpack.i.l.bf16 %v1022_v40  ;;  %v1019_v46 = vunpack.i.h.bf16 %v1017_v41  ;;  %v1018_v47 = vunpack.i.l.bf16 %v1017_v41  ;;  %v1024_v48 = vunpack.i.h.bf16 %v1022_v40 }
  0xeb   : > { %651 = vmatprep.subr.bf16.mxu1 %v573_v42  ;;  %692 = vmatprep.subr.bf16.mxu0 %v572_v43 }
  0xec   : > { %652 = vmatpush1.bf16.msra.mxu1 %v572_v43  ;;  %693 = vmatpush1.bf16.msra.mxu0 %v571_v44  ;;  %v373_v53 = vsel %vm372_vm6, %v1019_v46, %v1023_v45  ;;  %v374_v54 = vsel %vm372_vm6, %v1018_v47, %v1019_v46  ;;  %v375_v57 = vsel %vm372_vm6, %v1024_v48, %v1018_v47 }
  0xed   : > { %v1032_v49 = vpop.permute.xlu1 %1031  ;;  %v1027_v18 = vpop.permute.xlu0 %1026 }
  0xee   : > { %v1034_v50 = vunpack.i.h.bf16 %v1032_v49  ;;  %v1033_v51 = vunpack.i.l.bf16 %v1032_v49  ;;  %v1029_v52 = vunpack.i.h.bf16 %v1027_v18  ;;  %v1028_v19 = vunpack.i.l.bf16 %v1027_v18 }
  0xf0   : > { %v394_v55 = vsel %vm393_vm7, %v1029_v52, %v1033_v51  ;;  %v395_v56 = vsel %vm393_vm7, %v1028_v19, %v1029_v52  ;;  %v396_v58 = vsel %vm393_vm7, %v1034_v50, %v1028_v19 }
  0xf1   : > { %v1042_v59 = vpop.permute.xlu1 %1041  ;;  %v1037_v60 = vpop.permute.xlu0 %1036  ;;  %v576_v61 = vpack.c.bf16 %v394_v55, %v373_v53  ;;  %v575_v62 = vpack.c.bf16 %v395_v56, %v374_v54  ;;  %v574_v63 = vpack.c.bf16 %v396_v58, %v375_v57 }
  0xf2   : > { %v1043_v0 = vunpack.i.l.bf16 %v1042_v59  ;;  %v1039_v1 = vunpack.i.h.bf16 %v1037_v60  ;;  %v1038_v3 = vunpack.i.l.bf16 %v1037_v60  ;;  %v1044_v4 = vunpack.i.h.bf16 %v1042_v59 }
  0xf3   : > { %653 = vmatprep.subr.bf16.mxu1 %v576_v61  ;;  %694 = vmatprep.subr.bf16.mxu0 %v575_v62 }
  0xf4   : > { %654 = vmatpush1.bf16.msra.mxu1 %v575_v62  ;;  %695 = vmatpush1.bf16.msra.mxu0 %v574_v63  ;;  %v415_v10 = vsel %vm414_vm8, %v1039_v1, %v1043_v0  ;;  %v416_v11 = vsel %vm414_vm8, %v1038_v3, %v1039_v1  ;;  %v417_v14 = vsel %vm414_vm8, %v1044_v4, %v1038_v3 }
  0xf5   : > { %v1052_v5 = vpop.permute.xlu1 %1051  ;;  %v1047_v20 = vpop.permute.xlu0 %1046 }
  0xf6   : > { %v1054_v6 = vunpack.i.h.bf16 %v1052_v5  ;;  %v1053_v7 = vunpack.i.l.bf16 %v1052_v5  ;;  %v1049_v8 = vunpack.i.h.bf16 %v1047_v20  ;;  %v1048_v21 = vunpack.i.l.bf16 %v1047_v20 }
  0xf8   : > { %v436_v12 = vsel %vm435_vm9, %v1049_v8, %v1053_v7  ;;  %v437_v13 = vsel %vm435_vm9, %v1048_v21, %v1049_v8  ;;  %v438_v15 = vsel %vm435_vm9, %v1054_v6, %v1048_v21 }
  0xf9   : > { %v1062_v16 = vpop.permute.xlu1 %1061  ;;  %v1057_v30 = vpop.permute.xlu0 %1056  ;;  %v579_v9 = vpack.c.bf16 %v436_v12, %v415_v10  ;;  %v578_v31 = vpack.c.bf16 %v437_v13, %v416_v11  ;;  %v577_v32 = vpack.c.bf16 %v438_v15, %v417_v14 }
  0xfa   : > { %v1063_v33 = vunpack.i.l.bf16 %v1062_v16  ;;  %v1059_v17 = vunpack.i.h.bf16 %v1057_v30  ;;  %v1058_v34 = vunpack.i.l.bf16 %v1057_v30  ;;  %v1064_v35 = vunpack.i.h.bf16 %v1062_v16 }
  0xfb   : > { %655 = vmatprep.subr.bf16.mxu1 %v579_v9  ;;  %696 = vmatprep.subr.bf16.mxu0 %v578_v31 }
  0xfc   : > { %656 = vmatpush1.bf16.msra.mxu1 %v578_v31  ;;  %697 = vmatpush1.bf16.msra.mxu0 %v577_v32  ;;  %v457_v40 = vsel %vm456_vm10, %v1059_v17, %v1063_v33  ;;  %v458_v41 = vsel %vm456_vm10, %v1058_v34, %v1059_v17  ;;  %v459_v44 = vsel %vm456_vm10, %v1064_v35, %v1058_v34  ;;  %v630_v33 = vld [vmem:[#allocation5 + $0x4] sm:$0xf]  ;;  %v613_v17 = vld [vmem:[#allocation5] sm:$0xf] }
  0xfd   : > { %v1072_v36 = vpop.permute.xlu1 %1071  ;;  %v1067_v22 = vpop.permute.xlu0 %1066 }
  0xfe   : > { %v1074_v37 = vunpack.i.h.bf16 %v1072_v36  ;;  %v1073_v38 = vunpack.i.l.bf16 %v1072_v36  ;;  %v1069_v39 = vunpack.i.h.bf16 %v1067_v22  ;;  %v1068_v23 = vunpack.i.l.bf16 %v1067_v22 }
 0x100   : > { %v478_v42 = vsel %vm477_vm11, %v1069_v39, %v1073_v38  ;;  %v479_v43 = vsel %vm477_vm11, %v1068_v23, %v1069_v39  ;;  %v480_v45 = vsel %vm477_vm11, %v1074_v37, %v1068_v23 }
 0x101   : > { %v1082_v46 = vpop.permute.xlu1 %1081  ;;  %v1077_v47 = vpop.permute.xlu0 %1076  ;;  %v582_v48 = vpack.c.bf16 %v478_v42, %v457_v40  ;;  %v581_v49 = vpack.c.bf16 %v479_v43, %v458_v41  ;;  %v580_v18 = vpack.c.bf16 %v480_v45, %v459_v44 }
 0x102   : > { %v1083_v50 = vunpack.i.l.bf16 %v1082_v46  ;;  %v1079_v51 = vunpack.i.h.bf16 %v1077_v47  ;;  %v1078_v52 = vunpack.i.l.bf16 %v1077_v47  ;;  %v1084_v19 = vunpack.i.h.bf16 %v1082_v46 }
 0x103   : > { %657 = vmatprep.subr.bf16.mxu1 %v582_v48  ;;  %698 = vmatprep.subr.bf16.mxu0 %v581_v49 }
 0x104   : > { %658 = vmatpush1.bf16.msra.mxu1 %v581_v49  ;;  %699 = vmatpush1.bf16.msra.mxu0 %v580_v18  ;;  %v499_v57 = vsel %vm498_vm12, %v1079_v51, %v1083_v50  ;;  %v500_v58 = vsel %vm498_vm12, %v1078_v52, %v1079_v51  ;;  %v501_v61 = vsel %vm498_vm12, %v1084_v19, %v1078_v52 }
 0x105   : > { %v1092_v53 = vpop.permute.xlu1 %1091  ;;  %v1087_v24 = vpop.permute.xlu0 %1086 }
 0x106   : > { %v1094_v54 = vunpack.i.h.bf16 %v1092_v53  ;;  %v1093_v55 = vunpack.i.l.bf16 %v1092_v53  ;;  %v1089_v56 = vunpack.i.h.bf16 %v1087_v24  ;;  %v1088_v25 = vunpack.i.l.bf16 %v1087_v24 }
 0x108   : > { %v520_v59 = vsel %vm519_vm13, %v1089_v56, %v1093_v55  ;;  %v521_v60 = vsel %vm519_vm13, %v1088_v25, %v1089_v56  ;;  %v522_v62 = vsel %vm519_vm13, %v1094_v54, %v1088_v25 }
 0x109   : > { %v1102_v63 = vpop.permute.xlu1 %1101  ;;  %v1097_v0 = vpop.permute.xlu0 %1096  ;;  %v585_v1 = vpack.c.bf16 %v520_v59, %v499_v57  ;;  %v584_v3 = vpack.c.bf16 %v521_v60, %v500_v58  ;;  %v583_v4 = vpack.c.bf16 %v522_v62, %v501_v61 }
 0x10a   : > { %v1103_v5 = vunpack.i.l.bf16 %v1102_v63  ;;  %v1099_v20 = vunpack.i.h.bf16 %v1097_v0  ;;  %v1098_v6 = vunpack.i.l.bf16 %v1097_v0  ;;  %v1104_v7 = vunpack.i.h.bf16 %v1102_v63 }
 0x10b   : > { %659 = vmatprep.subr.bf16.mxu1 %v585_v1  ;;  %700 = vmatprep.subr.bf16.mxu0 %v584_v3 }
 0x10c   : > { %660 = vmatpush1.bf16.msra.mxu1 %v584_v3  ;;  %701 = vmatpush1.bf16.msra.mxu0 %v583_v4  ;;  %v541_v12 = vsel %vm540_vm14, %v1099_v20, %v1103_v5  ;;  %v542_v13 = vsel %vm540_vm14, %v1098_v6, %v1099_v20  ;;  %v543_v16 = vsel %vm540_vm14, %v1104_v7, %v1098_v6 }
 0x10d   : > { %v1112_v8 = vpop.permute.xlu1 %1111  ;;  %v1107_v26 = vpop.permute.xlu0 %1106 }
 0x10e   : > { %v1114_v21 = vunpack.i.h.bf16 %v1112_v8  ;;  %v1113_v10 = vunpack.i.l.bf16 %v1112_v8  ;;  %v1109_v11 = vunpack.i.h.bf16 %v1107_v26  ;;  %v1108_v27 = vunpack.i.l.bf16 %v1107_v26 }
 0x110   : > { %v562_v14 = vsel %vm561_vm15, %v1109_v11, %v1113_v10  ;;  %v563_v15 = vsel %vm561_vm15, %v1108_v27, %v1109_v11  ;;  %v564_v30 = vsel %vm561_vm15, %v1114_v21, %v1108_v27 }
 0x111   : > { %v588_v9 = vpack.c.bf16 %v562_v14, %v541_v12  ;;  %v587_v31 = vpack.c.bf16 %v563_v15, %v542_v13  ;;  %v586_v32 = vpack.c.bf16 %v564_v30, %v543_v16 }
 0x113   : > { %661 = vmatprep.subr.bf16.mxu1 %v588_v9  ;;  %702 = vmatprep.subr.bf16.mxu0 %v587_v31 }
 0x114   : > { %662 = vmatpush1.bf16.msra.mxu1 %v587_v31  ;;  %703 = vmatpush1.bf16.msra.mxu0 %v586_v32 }
 0x117   : > { %680 = vmatmul.mubr.bf16.vlgmr.msra.gmra.mrb[0].mxu1 %v630_v33  ;;  %721 = vmatmul.mubr.bf16.vlgmr.msra.gmra.mrb[0].mxu0 %v613_v17 }
 0x1ea   : > { %v681_v2 = vpop.f32.mrb[0].mxu1  ;;  %v722_v28 = vpop.f32.mrb[0].mxu0 }
 0x1eb   : > { %v723_v29 = vadd.f32 %v722_v28, %v681_v2  ;;  %v683_v34 = vpop.f32.mrb[1].mxu1  ;;  %v724_v35 = vpop.f32.mrb[1].mxu0 }
 0x1ec   : > { %v725_v36 = vadd.f32 %v724_v35, %v683_v34  ;;  %v685_v22 = vpop.f32.mrb[2].mxu1  ;;  %v726_v37 = vpop.f32.mrb[2].mxu0 }
 0x1ed   : > { %729 = vst [vmem:[%s196_s22] sm:$0x3f] %v723_v29  ;;  %v686_v38 = vpop.f32.mrb[3].mxu1  ;;  %v727_v39 = vpop.f32.mrb[3].mxu0 }
 0x1ee   : > { %730 = vst [vmem:[%s196_s22 + $0x8] sm:$0x3f] %v725_v36 }
 0x1ef PF: > { %s16_s16 = sadd.s32 1, %s1243_s16   ;;  %s1739_s9 = smov %s1219_s10 }
 0x1f0   : > { %p13_p4 = scmp.ge.s32.totalorder %s16_s16, 6   ;;  %s1740_s10 = smov %s1223_s11 }
 0x1f1   : > { %s1741_s11 = smov %s1385_s30  ;;  %s1742_s12 = smov %s1235_s14 }
 0x1f2   : > { %s1743_s13 = smov %s1239_s15  ;;  %s1744_s14 = smov %s1747_s24 }
 0x1f3   : > { %s1745_s15 = smov %s1751_s7  ;;  %15 = sbr.rel (!%p13_p4) target bundleno = 6 (0x6), region = 73 }
 0x1fa   :  { %761 = vsyncpa [#allocation4], 1 }
 0x1fb   :  { %763 = vsyncpa [#allocation4 + $0x1], 1 }
 0x1fc   :  { %764 = vsyncpa [#allocation6], 1 }

</bundles_post_ra>
